<compile_context>
chip_gen: v7x
topology: tpu7x:2x2x1
jax: 0.10.0
libtpu: 0.0.40
codegen_flags: <defaults>
</compile_context>

<pallas_src>
import jax
import jax.numpy as jnp
from jax.experimental import pallas as pl
from jax.experimental.pallas import tpu as pltpu

HID_PAD = 128   # fused hidden width: 2*H actor+critic lanes + 1 bias lane, zero-padded
OUT_PAD = 128   # fused output width: A logits + 1 value, zero-padded to full lane width


def actor_critic_kernel(x_ref, w1_ref, w2_ref, out_ref):
    # Layer 1 (actor+critic fused; bias folded via the ones-column of x):
    #   h = relu(x_aug @ W1)                                   [tb, HID_PAD]
    h = jnp.maximum(
        jnp.dot(x_ref[...], w1_ref[...], preferred_element_type=jnp.float32), 0.0)
    # Layer 2 (block-diagonal fused head; bias carried by the constant-one lane):
    #   out = h @ W2                                           [tb, OUT_PAD]
    out_ref[...] = jnp.dot(
        h, w2_ref[...], preferred_element_type=jnp.float32).astype(out_ref.dtype)


def pack_params(params):
    """Host/trace-side packing of the 8 PyTorch-style tensors into 2 MXU-friendly ones."""
    wa1, ba1 = params["wa1"], params["ba1"]   # (D, H), (1, H)
    wa2, ba2 = params["wa2"], params["ba2"]   # (H, A), (1, A)
    wc1, bc1 = params["wc1"], params["bc1"]   # (D, H), (1, H)
    wc2, bc2 = params["wc2"], params["bc2"]   # (H, 1), (1, 1)
    d_in, hidden = wa1.shape
    n_actions = wa2.shape[1]
    assert 2 * hidden + 1 <= HID_PAD and n_actions + 1 <= OUT_PAD

    ones_lane = 2 * hidden  # hidden lane held at constant 1.0 (carries layer-2 biases)

    # W1_packed: rows 0:D = [wa1 | wc1 | 0]; row D (hit by the appended ones
    # column of x) = [ba1 | bc1 | 1@ones_lane | 0].
    w1 = jnp.zeros((d_in + 1, HID_PAD), jnp.float32)
    w1 = w1.at[:d_in, :hidden].set(wa1)
    w1 = w1.at[:d_in, hidden:2 * hidden].set(wc1)
    w1 = w1.at[d_in, :hidden].set(ba1[0])
    w1 = w1.at[d_in, hidden:2 * hidden].set(bc1[0])
    w1 = w1.at[d_in, ones_lane].set(1.0)

    # W2_packed: block-diagonal — actor rows 0:H -> cols 0:A, critic rows H:2H ->
    # col A; the constant-one row carries [ba2 | bc2]; everything else zero.
    w2 = jnp.zeros((HID_PAD, OUT_PAD), jnp.float32)
    w2 = w2.at[:hidden, :n_actions].set(wa2)
    w2 = w2.at[hidden:2 * hidden, n_actions].set(wc2[:, 0])
    w2 = w2.at[ones_lane, :n_actions].set(ba2[0])
    w2 = w2.at[ones_lane, n_actions].set(bc2[0, 0])
    return w1, w2, n_actions


def actor_critic_forward(state, params, *, block_b=512):
    """state: [B, D_in] f32 -> (action_pred [B, A], value_pred [B, 1])."""
    w1, w2, n_actions = pack_params(params)
    B, d_in = state.shape
    assert w1.shape[0] == d_in + 1

    # Append the ones column that activates the bias row of W1.
    x_aug = jnp.concatenate([state, jnp.ones((B, 1), state.dtype)], axis=1)

    # Batch tiling: tile size is a multiple of 8 sublanes; pad B up to the tile.
    tb = block_b if B > block_b else -(-B // 8) * 8
    b_pad = -(-B // tb) * tb
    if b_pad != B:
        x_aug = jnp.pad(x_aug, ((0, b_pad - B), (0, 0)))

    out = pl.pallas_call(
        actor_critic_kernel,
        out_shape=jax.ShapeDtypeStruct((b_pad, OUT_PAD), jnp.float32),
        grid=(b_pad // tb,),
        in_specs=[
            pl.BlockSpec((tb, d_in + 1), lambda i: (i, 0)),          # x tile per step
            pl.BlockSpec((d_in + 1, HID_PAD), lambda i: (0, 0)),     # weights resident
            pl.BlockSpec((HID_PAD, OUT_PAD), lambda i: (0, 0)),
        ],
        out_specs=pl.BlockSpec((tb, OUT_PAD), lambda i: (i, 0)),     # lane-dense output
        compiler_params=pltpu.CompilerParams(
            dimension_semantics=("parallel",)),
    )(x_aug, w1, w2)

    action_pred = out[:B, :n_actions]
    value_pred = out[:B, n_actions:n_actions + 1]
    return action_pred, value_pred


def init_params(key, d_in, hidden, n_actions):
    """Deterministic synthetic parameter init (PyTorch-Linear-like scaling)."""
    ks = jax.random.split(key, 8)

    def lin(kw, kb, fan_in, fan_out):
        bound = 1.0 / jnp.sqrt(fan_in)
        w = jax.random.uniform(kw, (fan_in, fan_out), jnp.float32, -bound, bound)
        b = jax.random.uniform(kb, (1, fan_out), jnp.float32, -bound, bound)
        return w, b

    wa1, ba1 = lin(ks[0], ks[1], d_in, hidden)
    wa2, ba2 = lin(ks[2], ks[3], hidden, n_actions)
    wc1, bc1 = lin(ks[4], ks[5], d_in, hidden)
    wc2, bc2 = lin(ks[6], ks[7], hidden, 1)
    return dict(wa1=wa1, ba1=ba1, wa2=wa2, ba2=ba2,
                wc1=wc1, bc1=bc1, wc2=wc2, bc2=bc2)


def reference_forward(state, p):
    h_a = jnp.maximum(state @ p["wa1"] + p["ba1"], 0.0)
    act = h_a @ p["wa2"] + p["ba2"]
    h_c = jnp.maximum(state @ p["wc1"] + p["bc1"], 0.0)
    val = h_c @ p["wc2"] + p["bc2"]
    return act, val


if __name__ == "__main__":
    B, D_IN, HIDDEN, N_ACTIONS = 8, 16, 32, 4

    key = jax.random.PRNGKey(0)
    k_state, k_params = jax.random.split(key)
    state = jax.random.normal(k_state, (B, D_IN), jnp.float32)
    params = init_params(k_params, D_IN, HIDDEN, N_ACTIONS)

    action_pred, value_pred = actor_critic_forward(state, params)
    jax.block_until_ready((action_pred, value_pred))

    ref_act, ref_val = reference_forward(state, params)
    assert action_pred.shape == (B, N_ACTIONS)
    assert value_pred.shape == (B, 1)
    assert jnp.allclose(action_pred, ref_act, atol=1e-4, rtol=1e-4)
    assert jnp.allclose(value_pred, ref_val, atol=1e-4, rtol=1e-4)

    print("KERNEL_OK")
</pallas_src>

<mosaic_0001>
module attributes {stable_mosaic.version = 11 : i64} {
  func.func @actor_critic_kernel(%arg0: i32, %arg1: memref<8x17xf32, #tpu.memory_space<vmem>>, %arg2: memref<17x128xf32, #tpu.memory_space<vmem>>, %arg3: memref<128x128xf32, #tpu.memory_space<vmem>>, %arg4: memref<8x128xf32, #tpu.memory_space<vmem>>) attributes {dimension_semantics = [#tpu.dimension_semantics<parallel>], iteration_bounds = array<i64: 1>, scalar_prefetch = 0 : i64, scratch_operands = 0 : i64, tpu.core_type = #tpu.core_type<tc>, window_params = [{transform_indices = @transform_0, window_bounds = array<i64: 8, 17>}, {pipeline_mode = #tpu.pipeline_mode<synchronous>, transform_indices = @transform_1, window_bounds = array<i64: 17, 128>}, {pipeline_mode = #tpu.pipeline_mode<synchronous>, transform_indices = @transform_2, window_bounds = array<i64: 128, 128>}, {transform_indices = @transform_3, window_bounds = array<i64: 8, 128>}]} {
    %c0 = arith.constant 0 : index
    %c0_0 = arith.constant 0 : index
    %0 = vector.load %arg1[%c0, %c0_0] : memref<8x17xf32, #tpu.memory_space<vmem>>, vector<8x17xf32>
    %c0_1 = arith.constant 0 : index
    %c0_2 = arith.constant 0 : index
    %1 = vector.load %arg2[%c0_1, %c0_2] : memref<17x128xf32, #tpu.memory_space<vmem>>, vector<17x128xf32>
    %cst = arith.constant dense<0.000000e+00> : vector<8x128xf32>
    %2 = tpu.matmul %0, %1, %cst {dimension_numbers = #tpu.dot_dimension_numbers<[1], [0], [0], [1], [0, 0, 1, 1], [], []>} : vector<8x17xf32>, vector<17x128xf32>, vector<8x128xf32> -> vector<8x128xf32>
    %cst_3 = arith.constant 0.000000e+00 : f32
    %3 = vector.broadcast %cst_3 : f32 to vector<8x128xf32>
    %4 = arith.maximumf %2, %3 : vector<8x128xf32>
    %c0_4 = arith.constant 0 : index
    %c0_5 = arith.constant 0 : index
    %5 = vector.load %arg3[%c0_4, %c0_5] : memref<128x128xf32, #tpu.memory_space<vmem>>, vector<128x128xf32>
    %cst_6 = arith.constant dense<0.000000e+00> : vector<8x128xf32>
    %6 = tpu.matmul %4, %5, %cst_6 {dimension_numbers = #tpu.dot_dimension_numbers<[1], [0], [0], [1], [0, 0, 1, 1], [], []>} : vector<8x128xf32>, vector<128x128xf32>, vector<8x128xf32> -> vector<8x128xf32>
    %c0_7 = arith.constant 0 : index
    %c0_8 = arith.constant 0 : index
    %7 = vector.load %arg4[%c0_7, %c0_8] : memref<8x128xf32, #tpu.memory_space<vmem>>, vector<8x128xf32>
    tpu.vector_store %arg4[%c0_7, %c0_8], %6 {strides = array<i32>} : memref<8x128xf32, #tpu.memory_space<vmem>>, vector<8x128xf32>,
    return
  }
  func.func @transform_0(%arg0: i32) -> (i32, i32) {
    %c0_i32 = arith.constant 0 : i32
    %c0_i32_0 = arith.constant 0 : i32
    return %arg0, %c0_i32 : i32, i32
  }
  func.func @transform_1(%arg0: i32) -> (i32, i32) {
    %c0_i32 = arith.constant 0 : i32
    %c0_i32_0 = arith.constant 0 : i32
    %c0_i32_1 = arith.constant 0 : i32
    return %c0_i32, %c0_i32_0 : i32, i32
  }
  func.func @transform_2(%arg0: i32) -> (i32, i32) {
    %c0_i32 = arith.constant 0 : i32
    %c0_i32_0 = arith.constant 0 : i32
    %c0_i32_1 = arith.constant 0 : i32
    return %c0_i32, %c0_i32_0 : i32, i32
  }
  func.func @transform_3(%arg0: i32) -> (i32, i32) {
    %c0_i32 = arith.constant 0 : i32
    %c0_i32_0 = arith.constant 0 : i32
    return %arg0, %c0_i32 : i32, i32
  }
}

</mosaic_0001>

<bundles_post_ra>
// kernel: tpu_custom_call.1
= control target key start
LH: loop header
LB: loop body
LE: loop exit
PB: predicated region body
PF: predicated region fallthrough
CT: control target
= control target key end

     0   :  { %8 = vsyncpa [#allocation3], 0  ;;  %s520_s0 = inlined_call_operand.hbm [shape: f32[8,17], index: 0, kind: input, shape index: {}]   ;;  %s521_s1 = inlined_call_operand.hbm [shape: f32[17,128], index: 1, kind: input, shape index: {}]   ;;  %s522_s2 = inlined_call_operand.hbm [shape: f32[128,128], index: 2, kind: input, shape index: {}]   ;;  %s523_s3 = inlined_call_operand.hbm [shape: f32[8,128], index: 3, kind: output, shape index: {}]  }
   0x1   :  { %9 = vsyncpa [#allocation6], 0 }
   0x2   :  { %10 = vsyncpa [#allocation4], 0  ;;  %s437_s12 = smov [#allocation5]   ;;  %s343_s16 = scalar_lea.hbm %s521_s1, 384 }
   0x3   :  { %s26_s13 = sshll.u32 %s437_s12, 4  ;;  %p344_p0 = scmp.ne.s32.totalorder %s521_s1, %s343_s16  ;;  %s27_s13 = int_to_ptr.vmem [resolvable:$true] %s26_s13 }
   0x4   :  { %p347_p1 = scmp.lt.u32.totalorder %s343_s16, %s521_s1 }
   0x6   :  { %p349_p2 = pnand %p347_p1, %p344_p0 }
   0x8   :  { %352 = shalt.err (!%p349_p2)
}
   0x9   :  { %s353_s21 = scalar_lea.vmem %s27_s13, 384  ;;  %p358_p4 = scmp.lt.s32.totalorder %s27_s13, %s27_s13 }
   0xa   :  { %p354_p3 = scmp.ne.s32.totalorder %s27_s13, %s353_s21  ;;  %p359_p5 = scmp.lt.s32.totalorder %s353_s21, %s353_s21 }
   0xc   :  { %p360_p6 = por %p359_p5, %p358_p4 }
   0xe   :  { %p361_p7 = pnand %p360_p6, %p354_p3 }
  0x10   :  { %364 = shalt.err (!%p361_p7)
}
  0x11   :  { %s438_s22 = smov 128   ;;  %s439_s23 = smov 8  }
  0x12   :  { %32 = dma.hbm_to_vmem [thread:$0]  %s521_s1, 384, %s27_s13, [#allocation6], %s438_s22, %s438_s22, %s439_s23  }
  0x13   :  { %s440_s26 = smov [#allocation2]   ;;  %s441_s28 = smov [#allocation7]  }
  0x14   :  { %s17_s27 = sshll.u32 %s440_s26, 4  ;;  %s38_s29 = sshll.u32 %s441_s28, 4  ;;  %s18_s27 = int_to_ptr.vmem [resolvable:$true] %s17_s27  ;;  %s39_s29 = int_to_ptr.vmem [resolvable:$true] %s38_s29 }
  0x15   :  { %s365_s5 = scalar_lea.hbm %s520_s0, 128 }
  0x16   :  { %p366_p8 = scmp.ne.s32.totalorder %s520_s0, %s365_s5  ;;  %p369_p9 = scmp.lt.u32.totalorder %s365_s5, %s520_s0 }
  0x18   :  { %p371_p10 = pnand %p369_p9, %p366_p8 }
  0x1a   :  { %374 = shalt.err (!%p371_p10)
}
  0x1b   :  { %s375_s1 = scalar_lea.vmem %s18_s27, 128  ;;  %p380_p12 = scmp.lt.s32.totalorder %s18_s27, %s18_s27 }
  0x1c   :  { %p376_p11 = scmp.ne.s32.totalorder %s18_s27, %s375_s1  ;;  %p381_p13 = scmp.lt.s32.totalorder %s375_s1, %s375_s1 }
  0x1e   :  { %p382_p0 = por %p381_p13, %p380_p12 }
  0x20   :  { %p383_p1 = pnand %p382_p0, %p376_p11 }
  0x22   :  { %386 = shalt.err (!%p383_p1)
}
  0x23   :  { %20 = dma.hbm_to_vmem [thread:$0]  %s520_s0, 128, %s18_s27, [#allocation3]  }
  0x24   :  { %s387_s14 = scalar_lea.hbm %s522_s2, 2048 }
  0x25   :  { %p388_p2 = scmp.ne.s32.totalorder %s522_s2, %s387_s14  ;;  %p391_p3 = scmp.lt.u32.totalorder %s387_s14, %s522_s2 }
  0x27   :  { %p393_p4 = pnand %p391_p3, %p388_p2 }
  0x29   :  { %396 = shalt.err (!%p393_p4)
}
  0x2a   :  { %s397_s19 = scalar_lea.vmem %s39_s29, 2048  ;;  %p402_p6 = scmp.lt.s32.totalorder %s39_s29, %s39_s29 }
  0x2b   :  { %p398_p5 = scmp.ne.s32.totalorder %s39_s29, %s397_s19  ;;  %p403_p7 = scmp.lt.s32.totalorder %s397_s19, %s397_s19 }
  0x2d   :  { %p404_p8 = por %p403_p7, %p402_p6 }
  0x2f   :  { %p405_p9 = pnand %p404_p8, %p398_p5 }
  0x31   :  { %408 = shalt.err (!%p405_p9)
}
  0x32   :  { %44 = dma.hbm_to_vmem [thread:$0]  %s522_s2, 2048, %s39_s29, [#allocation6], %s438_s22, %s438_s22, %s439_s23  }
  0x33   :  { %431 = dma.done.wait [#allocation3], 128  }
  0x34   :  { %432 = vsyncadd [#allocation3], 4294967168 }
  0x35   :  { %433 = dma.done.wait [#allocation6], 2432  }
  0x36   :  { %434 = vsyncadd [#allocation6], 4294964864  ;;  %v442_v0 = vmov 0.0|0.0   ;;  %vm443_vm0 = vmmov 0   ;;  %v444_v1 = vmov 0.0   ;;  %v55_v2 = vld [vmem:[#allocation5] sm:$0xff] }
  0x37   :  { %307 = vmatprep.subr.bf16.mxu0 %v442_v0  ;;  %269 = vmatprep.mubr.msk.f32.mxu0 %vm443_vm0, %v444_v1  ;;  %v56_v3 = vld [vmem:[#allocation5 + $0x8] sm:$0xff]  ;;  %v137_v5 = vld [vmem:[#allocation7] sm:$0xff]  ;;  %v138_v6 = vld [vmem:[#allocation7 + $0x8] sm:$0xff]  ;;  %vm62_vm1 = vcmask 1040384   ;;  %vm58_vm2 = vcmask 138240   ;;  %s445_s2 = smov [#allocation8]  }
  0x38   :  { %310 = vmatprep.subr.bf16.mxu1 %v442_v0  ;;  %304 = vmatprep.mubr.msk.f32.mxu1 %vm443_vm0, %v444_v1  ;;  %v308_v4 = vpack.c.bf16 %v56_v3, %v55_v2  ;;  %v311_v7 = vpack.c.bf16 %v138_v6, %v137_v5  ;;  %v139_v8 = vld [vmem:[#allocation7 + $0x10] sm:$0xff]  ;;  %v140_v9 = vld [vmem:[#allocation7 + $0x18] sm:$0xff]  ;;  %v54_v12 = vld [vmem:[#allocation2] sm:$0xff]  ;;  %s230_s21 = sshll.u32 %s445_s2, 4  ;;  %s231_s21 = int_to_ptr.vmem [resolvable:$true] %s230_s21 }
  0x39   :  { %v57_v10 = vld [vmem:[#allocation5 + $0x10] sm:$0x1]  ;;  %v314_v11 = vpack.c.bf16 %v140_v9, %v139_v8  ;;  %v141_v13 = vld [vmem:[#allocation7 + $0x20] sm:$0xff]  ;;  %v142_v14 = vld [vmem:[#allocation7 + $0x28] sm:$0xff]  ;;  %s409_s22 = scalar_lea.vmem %s231_s21, 128  ;;  %p414_p11 = scmp.lt.s32.totalorder %s231_s21, %s231_s21 }
  0x3a   :  { %309 = vmatpush3.bf16.msra.mxu0 %v308_v4  ;;  %312 = vmatpush3.bf16.msra.mxu1 %v311_v7  ;;  %v317_v15 = vpack.c.bf16 %v142_v14, %v141_v13  ;;  %v143_v16 = vld [vmem:[#allocation7 + $0x30] sm:$0xff]  ;;  %v144_v17 = vld [vmem:[#allocation7 + $0x38] sm:$0xff]  ;;  %v145_v19 = vld [vmem:[#allocation7 + $0x40] sm:$0xff]  ;;  %p410_p10 = scmp.ne.s32.totalorder %s231_s21, %s409_s22  ;;  %p415_p12 = scmp.lt.s32.totalorder %s409_s22, %s409_s22 }
  0x3b   :  { %267 = vmatprep.subr.mxu0 %v444_v1  ;;  %313 = vmatprep.subr.bf16.mxu1 %v442_v0  ;;  %v320_v18 = vpack.c.bf16 %v144_v17, %v143_v16  ;;  %v146_v20 = vld [vmem:[#allocation7 + $0x48] sm:$0xff]  ;;  %v147_v22 = vld [vmem:[#allocation7 + $0x50] sm:$0xff]  ;;  %v148_v23 = vld [vmem:[#allocation7 + $0x58] sm:$0xff] }
  0x3c   :  { %v323_v21 = vpack.c.bf16 %v146_v20, %v145_v19  ;;  %v326_v24 = vpack.c.bf16 %v148_v23, %v147_v22  ;;  %v149_v25 = vld [vmem:[#allocation7 + $0x60] sm:$0xff]  ;;  %v150_v26 = vld [vmem:[#allocation7 + $0x68] sm:$0xff]  ;;  %v151_v28 = vld [vmem:[#allocation7 + $0x70] sm:$0xff]  ;;  %p416_p13 = por %p415_p12, %p414_p11 }
  0x3d   :  { %v329_v27 = vpack.c.bf16 %v150_v26, %v149_v25  ;;  %v152_v29 = vld [vmem:[#allocation7 + $0x78] sm:$0xff] }
  0x3e   :  { %268 = vmatpush3.msk.msra.mxu0 %vm62_vm1, %v57_v10  ;;  %315 = vmatpush3.bf16.msra.mxu1 %v314_v11  ;;  %v332_v30 = vpack.c.bf16 %v152_v29, %v151_v28  ;;  %p417_p0 = pnand %p416_p13, %p410_p10 }
  0x3f   :  { %270 = vmatmul.mubr.msk.f32.vlgmr.msra.gmra.mrb[0].mxu0 %vm58_vm2, %v54_v12  ;;  %316 = vmatprep.subr.bf16.mxu1 %v442_v0 }
  0x42   :  { %318 = vmatpush3.bf16.msra.mxu1 %v317_v15 }
  0x43   :  { %319 = vmatprep.subr.bf16.mxu1 %v442_v0 }
  0x46   :  { %321 = vmatpush3.bf16.msra.mxu1 %v320_v18 }
  0x47   :  { %322 = vmatprep.subr.bf16.mxu1 %v442_v0 }
  0x4a   :  { %324 = vmatpush3.bf16.msra.mxu1 %v323_v21 }
  0x4b   :  { %325 = vmatprep.subr.bf16.mxu1 %v442_v0 }
  0x4e   :  { %327 = vmatpush3.bf16.msra.mxu1 %v326_v24 }
  0x4f   :  { %328 = vmatprep.subr.bf16.mxu1 %v442_v0 }
  0x52   :  { %330 = vmatpush3.bf16.msra.mxu1 %v329_v27 }
  0x53   :  { %331 = vmatprep.subr.bf16.mxu1 %v442_v0 }
  0x56   :  { %333 = vmatpush3.bf16.msra.mxu1 %v332_v30 }
 0x112   :  { %v132_v31 = vpop.f32.mrb[0].mxu0 }
 0x113   :  { %v136_v32 = vmax.f32 %v132_v31, 0.0  ;;  %v271_v33 = vpop.f32.mrb[1].mxu0 }
 0x115   :  { %305 = vmatmul.mubr.f32.vlgmr.msra.gmra.mrb[0].mxu1 %v136_v32 }
 0x1e8   :  { %v219_v34 = vpop.f32.mrb[0].mxu1 }
 0x1e9   :  { %223 = vst [vmem:[#allocation8] sm:$0xff] %v219_v34  ;;  %v306_v35 = vpop.f32.mrb[1].mxu1 }
 0x1ea   :  { %420 = shalt.err (!%p417_p0)
}
 0x1eb   :  { %s421_s25 = scalar_lea.hbm %s523_s3, 128 }
 0x1ec   :  { %p422_p1 = scmp.ne.s32.totalorder %s523_s3, %s421_s25  ;;  %p425_p2 = scmp.lt.u32.totalorder %s421_s25, %s523_s3 }
 0x1ee   :  { %p427_p3 = pnand %p425_p2, %p422_p1 }
 0x1f0   :  { %430 = shalt.err (!%p427_p3)
}
 0x1f1   :  { %233 = dma.vmem_to_hbm [thread:$0]  %s231_s21, 128, %s523_s3, [#allocation4]  }
 0x1f2   :  { %435 = dma.done.wait [#allocation4], 128  }
 0x1f3   :  { %436 = vsyncadd [#allocation4], 4294967168 }
 0x1f4   :  { %237 = vsyncpa [#allocation3], 1 }
 0x1f5   :  { %238 = vsyncpa [#allocation6], 1 }
 0x1f6   :  { %239 = vsyncpa [#allocation4], 1 }

</bundles_post_ra>
